<compile_context>
chip_gen: v6e
topology: v6e:2x2x1
jax: 0.10.0
libtpu: 0.0.40
codegen_flags: <defaults>
</compile_context>

<pallas_src>
import functools

import jax
import jax.numpy as jnp
from jax.experimental import pallas as pl
from jax.experimental.pallas import tpu as pltpu


def _dropout_kernel(bits_ref, x_ref, o_ref, *, threshold, scale):
    # keep iff uniform > p  <=>  raw 32-bit draw > p * 2^32
    keep = bits_ref[...] > jnp.uint32(threshold)
    scaled = x_ref[...] * jnp.asarray(scale, dtype=x_ref.dtype)
    o_ref[...] = jnp.where(keep, scaled, jnp.asarray(0, dtype=x_ref.dtype))


def dropout(x, *, p=0.5, key=None, training=True):
    """Pallas implementation of the Dropout module's forward pass."""
    if not training or p == 0.0:
        return x  # eval mode / p=0: identity, matches the PyTorch module.
    if p >= 1.0:
        # 1/(1-p) would overflow; everything is dropped anyway.
        return jnp.zeros_like(x)
    if key is None:
        key = jax.random.PRNGKey(0)

    orig_shape = x.shape
    # Dropout is elementwise: flatten to (rows, features) with features on lanes.
    if x.ndim == 1:
        x2 = x.reshape(1, -1)
    else:
        x2 = x.reshape(-1, x.shape[-1])
    n_rows, n_feat = x2.shape

    # Random draw matching torch.rand(input.shape): one uint32 per element.
    bits = jax.random.bits(key, shape=(n_rows, n_feat), dtype=jnp.uint32)

    # ---- tile sizing -------------------------------------------------------
    # Per row resident in VMEM (double-buffered in/out): bits + x + out.
    itemsize = jnp.dtype(x.dtype).itemsize
    bytes_per_row = n_feat * (4 + 2 * itemsize) * 2  # x2 for double buffering
    max_rows_by_vmem = max(8, (8 * 1024 * 1024) // max(bytes_per_row, 1))
    if n_rows <= 8:
        tm = n_rows                      # full-extent block: always legal
    else:
        tm = min(n_rows, 512, max_rows_by_vmem)
        tm = max(8, (tm // 8) * 8)       # row-block must be a multiple of 8
        if tm >= n_rows:
            tm = n_rows
    grid = (pl.cdiv(n_rows, tm),)

    threshold = min(int(p * (1 << 32)), (1 << 32) - 1)
    scale = 1.0 / (1.0 - p)
    kernel = functools.partial(_dropout_kernel, threshold=threshold, scale=scale)

    out2 = pl.pallas_call(
        kernel,
        out_shape=jax.ShapeDtypeStruct((n_rows, n_feat), x.dtype),
        grid=grid,
        in_specs=[
            pl.BlockSpec((tm, n_feat), lambda i: (i, 0)),   # random bits
            pl.BlockSpec((tm, n_feat), lambda i: (i, 0)),   # activations
        ],
        out_specs=pl.BlockSpec((tm, n_feat), lambda i: (i, 0)),
        compiler_params=pltpu.CompilerParams(
            dimension_semantics=("parallel",),   # v7x: shard rows over 2 TCs
            vmem_limit_bytes=32 * 1024 * 1024,   # explicit cap, safe on v7x
        ),
    )(bits, x2)

    return out2.reshape(orig_shape)


if __name__ == "__main__":
    p = 0.5
    key = jax.random.PRNGKey(0)
    xkey, dkey = jax.random.split(key)

    # Small MLP-style activation: batch=8, hidden=128.
    x = jax.random.normal(xkey, (8, 128), dtype=jnp.float32)

    y = dropout(x, p=p, key=dkey, training=True)
    y = jax.block_until_ready(y)

    # Every output element is either 0 (dropped) or x / (1 - p) (kept & scaled).
    scaled = x / (1.0 - p)
    is_zero = jnp.isclose(y, 0.0)
    is_scaled = jnp.isclose(y, scaled, rtol=1e-6, atol=1e-6)
    assert bool(jnp.all(is_zero | is_scaled)), "dropout output mismatch"
    # With 1024 elements and p=0.5, both branches must occur.
    assert bool(jnp.any(is_zero)) and bool(jnp.any(~is_zero)), "degenerate mask"

    # Eval mode is identity.
    y_eval = jax.block_until_ready(dropout(x, p=p, key=dkey, training=False))
    assert bool(jnp.all(y_eval == x))

    # p >= 1 guard: all zeros (no inf/nan).
    y_one = jax.block_until_ready(dropout(x, p=1.0, key=dkey, training=True))
    assert bool(jnp.all(y_one == 0.0))

    print("KERNEL_OK")
</pallas_src>

<mosaic_0001>
module attributes {stable_mosaic.version = 11 : i64} {
  func.func @_dropout_kernel(%arg0: i32, %arg1: memref<8x128xi32, #tpu.memory_space<vmem>>, %arg2: memref<8x128xf32, #tpu.memory_space<vmem>>, %arg3: memref<8x128xf32, #tpu.memory_space<vmem>>) attributes {dimension_semantics = [#tpu.dimension_semantics<parallel>], iteration_bounds = array<i64: 1>, scalar_prefetch = 0 : i64, scratch_operands = 0 : i64, tpu.core_type = #tpu.core_type<tc>, window_params = [{transform_indices = @transform_0, window_bounds = array<i64: 8, 128>}, {transform_indices = @transform_1, window_bounds = array<i64: 8, 128>}, {transform_indices = @transform_2, window_bounds = array<i64: 8, 128>}]} {
    %c0 = arith.constant 0 : index
    %c0_0 = arith.constant 0 : index
    %0 = vector.load %arg1[%c0, %c0_0] : memref<8x128xi32, #tpu.memory_space<vmem>>, vector<8x128xi32>
    %c-2147483648_i32 = arith.constant -2147483648 : i32
    %1 = vector.broadcast %c-2147483648_i32 : i32 to vector<8x128xi32>
    %2 = arith.cmpi ugt, %0, %1 : vector<8x128xi32>
    %c0_1 = arith.constant 0 : index
    %c0_2 = arith.constant 0 : index
    %3 = vector.load %arg2[%c0_1, %c0_2] : memref<8x128xf32, #tpu.memory_space<vmem>>, vector<8x128xf32>
    %cst = arith.constant 2.000000e+00 : f32
    %4 = vector.broadcast %cst : f32 to vector<8x128xf32>
    %5 = arith.mulf %3, %4 : vector<8x128xf32>
    %cst_3 = arith.constant 0.000000e+00 : f32
    %6 = vector.broadcast %cst_3 : f32 to vector<8x128xf32>
    %7 = arith.select %2, %5, %6 : vector<8x128xi1>, vector<8x128xf32>
    %c0_4 = arith.constant 0 : index
    %c0_5 = arith.constant 0 : index
    %8 = vector.load %arg3[%c0_4, %c0_5] : memref<8x128xf32, #tpu.memory_space<vmem>>, vector<8x128xf32>
    tpu.vector_store %arg3[%c0_4, %c0_5], %7 {strides = array<i32>} : memref<8x128xf32, #tpu.memory_space<vmem>>, vector<8x128xf32>,
    return
  }
  func.func @transform_0(%arg0: i32) -> (i32, i32) {
    %c0_i32 = arith.constant 0 : i32
    %c0_i32_0 = arith.constant 0 : i32
    return %arg0, %c0_i32 : i32, i32
  }
  func.func @transform_1(%arg0: i32) -> (i32, i32) {
    %c0_i32 = arith.constant 0 : i32
    %c0_i32_0 = arith.constant 0 : i32
    return %arg0, %c0_i32 : i32, i32
  }
  func.func @transform_2(%arg0: i32) -> (i32, i32) {
    %c0_i32 = arith.constant 0 : i32
    %c0_i32_0 = arith.constant 0 : i32
    return %arg0, %c0_i32 : i32, i32
  }
}

</mosaic_0001>

<bundles_post_ra>
// kernel: tpu_custom_call.1
= control target key start
LH: loop header
LB: loop body
LE: loop exit
PB: predicated region body
PF: predicated region fallthrough
CT: control target
= control target key end

     0   :  { %7 = vsyncpa [#allocation3], 0  ;;  %s154_s0 = inlined_call_operand.hbm [shape: u32[8,128], index: 0, kind: input, shape index: {}]   ;;  %s155_s1 = inlined_call_operand.hbm [shape: f32[8,128], index: 1, kind: input, shape index: {}]   ;;  %s156_s2 = inlined_call_operand.hbm [shape: f32[8,128], index: 2, kind: output, shape index: {}]  }
   0x1   :  { %8 = vsyncpa [#allocation6], 0 }
   0x2   :  { %9 = vsyncpa [#allocation4], 0  ;;  %s127_s9 = smov [#allocation2]   ;;  %s128_s11 = smov [#allocation5]  }
   0x3   :  { %s16_s10 = sshll.u32 %s127_s9, 4  ;;  %s26_s12 = sshll.u32 %s128_s11, 4  ;;  %s17_s10 = int_to_ptr.vmem [resolvable:$true] %s16_s10  ;;  %s27_s12 = int_to_ptr.vmem [resolvable:$true] %s26_s12 }
   0x4   :  { %s69_s13 = scalar_lea.vmem %s17_s10, 128  ;;  %p74_p1 = scmp.lt.s32.totalorder %s17_s10, %s17_s10 }
   0x5   :  { %p70_p0 = scmp.ne.s32.totalorder %s17_s10, %s69_s13  ;;  %p75_p2 = scmp.lt.s32.totalorder %s69_s13, %s69_s13 }
   0x7   :  { %p76_p3 = por %p75_p2, %p74_p1 }
   0x9   :  { %p77_p4 = pnand %p76_p3, %p70_p0 }
   0xb   :  { %80 = shalt.err (!%p77_p4)
}
   0xc   :  { %19 = dma.hbm_to_vmem [thread:$0]  %s154_s0, 128, %s17_s10, [#allocation3]  }
   0xd   :  { %s89_s16 = scalar_lea.vmem %s27_s12, 128  ;;  %p94_p6 = scmp.lt.s32.totalorder %s27_s12, %s27_s12 }
   0xe   :  { %p90_p5 = scmp.ne.s32.totalorder %s27_s12, %s89_s16  ;;  %p95_p7 = scmp.lt.s32.totalorder %s89_s16, %s89_s16 }
  0x10   :  { %p96_p8 = por %p95_p7, %p94_p6 }
  0x12   :  { %p97_p9 = pnand %p96_p8, %p90_p5 }
  0x14   :  { %100 = shalt.err (!%p97_p9)
}
  0x15   :  { %29 = dma.hbm_to_vmem [thread:$0]  %s155_s1, 128, %s27_s12, [#allocation6]  }
  0x16   :  { %121 = dma.done.wait [#allocation3], 128  }
  0x17   :  { %122 = vsyncadd [#allocation3], 4294967168 }
  0x18   :  { %123 = dma.done.wait [#allocation6], 128  }
  0x19   :  { %124 = vsyncadd [#allocation6], 4294967168  ;;  %s129_s19 = smov [#allocation7]   ;;  %v36_v0 = vld [vmem:[#allocation2] sm:$0xff]  ;;  %v38_v1 = vld [vmem:[#allocation5] sm:$0xff] }
  0x1a   :  { %s48_s20 = sshll.u32 %s129_s19, 4  ;;  %vm37_vm0 = vcmp.gt.u32.totalorder %v36_v0, 2147483648  ;;  %v39_v2 = vmul.f32 2.0, %v38_v1  ;;  %s49_s20 = int_to_ptr.vmem [resolvable:$true] %s48_s20 }
  0x1b   :  { %s101_s0 = scalar_lea.vmem %s49_s20, 128  ;;  %p106_p11 = scmp.lt.s32.totalorder %s49_s20, %s49_s20 }
  0x1c   :  { %v40_v3 = vsel %vm37_vm0, %v39_v2, 0.0  ;;  %p102_p10 = scmp.ne.s32.totalorder %s49_s20, %s101_s0  ;;  %p107_p12 = scmp.lt.s32.totalorder %s101_s0, %s101_s0 }
  0x1d   :  { %41 = vst [vmem:[#allocation7] sm:$0xff] %v40_v3 }
  0x1e   :  { %p108_p13 = por %p107_p12, %p106_p11 }
  0x20   :  { %p109_p0 = pnand %p108_p13, %p102_p10 }
  0x22   :  { %112 = shalt.err (!%p109_p0)
}
  0x23   :  { %51 = dma.vmem_to_hbm [thread:$0]  %s49_s20, 128, %s156_s2, [#allocation4]  }
  0x24   :  { %125 = dma.done.wait [#allocation4], 128  }
  0x25   :  { %126 = vsyncadd [#allocation4], 4294967168 }
  0x26   :  { %55 = vsyncpa [#allocation3], 1 }
  0x27   :  { %56 = vsyncpa [#allocation6], 1 }
  0x28   :  { %57 = vsyncpa [#allocation4], 1 }

</bundles_post_ra>
